<compile_context>
chip_gen: v7x
topology: tpu7x:2x2x1
jax: 0.10.0
libtpu: 0.0.40
codegen_flags: <defaults>
</compile_context>

<pallas_src>
import functools

import jax
import jax.numpy as jnp
from jax.experimental import pallas as pl
from jax.experimental.pallas import tpu as pltpu


def _largest_divisor_leq(n, cap):
    cap = int(max(1, min(n, cap)))
    for d in range(cap, 0, -1):
        if n % d == 0:
            return d
    return 1


def _sqreg_kernel(x_ref, out_ref, *, p, channels, hw, ts, masked):
    # x_ref  : (TB, C, TS, 128) input tile, spatially dense in (sublane, lane)
    # out_ref: (1, 1) SMEM partial loss sum for this (batch, spatial) block.

    # Sum of squares over channels: per-channel ref loads (keeps vld fused
    # with compute) accumulated into a few partials (breaks the serial chain).
    n_part = min(channels, 4)
    parts = [None] * n_part
    for c in range(channels):
        xc = x_ref[:, c].astype(jnp.float32)           # (TB, TS, 128)
        sq = xc * xc
        k = c % n_part
        parts[k] = sq if parts[k] is None else parts[k] + sq
    s = parts[0]
    for t in parts[1:]:
        s = s + t

    d = jnp.float32(1.0) - s
    if p == 1:
        loss = jnp.abs(d)
    elif p == 2:
        loss = d * d                                    # single VPU multiply
    else:
        # Matches torch.pow (non-integer p with s > 1 yields NaN, as in torch).
        loss = d ** p

    if masked:
        # Zero out lane-padding pixels and ragged spatial edge rows so they
        # contribute exactly 0 (no analytic pad correction needed).
        j = pl.program_id(1)
        row = jax.lax.broadcasted_iota(jnp.int32, (ts, 128), 0) + j * ts
        lane = jax.lax.broadcasted_iota(jnp.int32, (ts, 128), 1)
        valid = (row * 128 + lane) < hw                 # (TS, 128)
        loss = jnp.where(valid[None, :, :], loss, jnp.float32(0.0))

    # Fold the batch-tile axis with VPU adds, then one small cross-lane reduce.
    out_ref[0, 0] = jnp.sum(jnp.sum(loss, axis=0))


def square_regularize_loss(x, p=1, *, target_block_bytes=8 * 1024 * 1024):
    """x: (N, C, H, W) float array. Returns the scalar loss (float32)."""
    N, C, H, W = x.shape
    HW = H * W
    itemsize = jnp.dtype(x.dtype).itemsize
    # dtype-native sublane tile: 8 rows for f32, 16 for bf16, 32 for int8/fp8.
    sub = {4: 8, 2: 16, 1: 32}.get(itemsize, 8)

    NS = pl.cdiv(HW, 128)                   # sublane rows per (n, c) image
    HW128 = NS * 128

    xr = x.reshape(N, C, HW)
    if HW128 != HW:
        # Minimal lane padding only (<= 127 elements per (n, c) row); padded
        # pixels are masked to 0 inside the kernel.
        xr = jnp.pad(xr, ((0, 0), (0, 0), (0, HW128 - HW)))
    xr = xr.reshape(N, C, NS, 128)          # free reshape of contiguous data

    # --- block sizing -------------------------------------------------------
    # Cap blocks at 16 MiB so two double-buffered blocks stay well inside the
    # 48 MiB scoped VMEM limit on all generations (v7x: 64 MiB physical).
    budget = max(1, min(int(target_block_bytes), 16 * 1024 * 1024))
    row_bytes = C * 128 * itemsize           # one (C-deep) sublane row
    per_image_bytes = NS * row_bytes

    if NS <= sub or per_image_bytes <= budget:
        # Small images: full spatial extent per block (TS == NS satisfies the
        # "equal to full dim" exception even when NS % sub != 0); tile over
        # batch with a TB that divides N exactly (no ragged batch blocks).
        TS = NS
        TB = _largest_divisor_leq(N, budget // max(1, per_image_bytes))
    else:
        # Large images: one batch element per block, tile the spatial axis
        # with a lane-dense, sublane-tile-aligned block.
        TB = 1
        ts = max(sub, (budget // row_bytes) // sub * sub)
        TS = min(ts, (NS // sub) * sub)

    nb = N // TB
    ns = pl.cdiv(NS, TS)
    # Mask needed iff lane padding exists or the last spatial block is ragged.
    masked = (HW128 != HW) or (NS % TS != 0)

    partials = pl.pallas_call(
        functools.partial(
            _sqreg_kernel, p=p, channels=C, hw=HW, ts=TS, masked=masked),
        out_shape=jax.ShapeDtypeStruct((nb, ns), jnp.float32),
        grid_spec=pltpu.PrefetchScalarGridSpec(
            num_scalar_prefetch=0,
            grid=(nb, ns),
            in_specs=[pl.BlockSpec((TB, C, TS, 128), lambda i, j: (i, 0, j, 0))],
            out_specs=pl.BlockSpec(
                (1, 1), lambda i, j: (i, j), memory_space=pltpu.SMEM),
        ),
        compiler_params=pltpu.CompilerParams(
            # Per-(i, j) partials => no carried state => both axes parallel,
            # so v7x's two TensorCores share the grid even when nb == 1.
            dimension_semantics=("parallel", "parallel"),
            vmem_limit_bytes=48 * 1024 * 1024,
        ),
    )(xr)

    total = jnp.sum(partials)
    # mean over (N, H, W), then divide by feature_num = C.
    return total / jnp.float32(N * HW) / jnp.float32(C)


def _reference(x, p=1):
    s = jnp.sum(x.astype(jnp.float32) ** 2, axis=1)
    d = 1.0 - s
    l = jnp.abs(d) if p == 1 else d ** p
    return jnp.mean(l) / x.shape[1]


if __name__ == "__main__":
    key = jax.random.PRNGKey(0)
    x = jax.random.normal(key, (2, 4, 16, 16), dtype=jnp.float32)

    # p == 1 path (single block, no mask)
    out = jax.block_until_ready(square_regularize_loss(x, p=1))
    ref = _reference(x, p=1)
    assert jnp.allclose(out, ref, rtol=1e-5, atol=1e-5), (out, ref)

    # p != 1 path
    out2 = jax.block_until_ready(square_regularize_loss(x, p=2))
    ref2 = _reference(x, p=2)
    assert jnp.allclose(out2, ref2, rtol=1e-5, atol=1e-5), (out2, ref2)

    # HW not a multiple of 128 (exercises the in-kernel lane mask)
    x3 = jax.random.normal(jax.random.PRNGKey(1), (2, 3, 20, 20), dtype=jnp.float32)
    out3 = jax.block_until_ready(square_regularize_loss(x3, p=1))
    ref3 = _reference(x3, p=1)
    assert jnp.allclose(out3, ref3, rtol=1e-5, atol=1e-5), (out3, ref3)

    # Multi-block grid on both (parallel) axes: batch blocks x spatial blocks
    x4 = jax.random.normal(jax.random.PRNGKey(2), (2, 4, 64, 64), dtype=jnp.float32)
    out4 = jax.block_until_ready(
        square_regularize_loss(x4, p=1, target_block_bytes=8192))
    ref4 = _reference(x4, p=1)
    assert jnp.allclose(out4, ref4, rtol=1e-5, atol=1e-5), (out4, ref4)

    # Ragged last spatial block (NS % TS != 0) handled by the in-kernel mask
    x5 = jax.random.normal(jax.random.PRNGKey(3), (1, 4, 48, 48), dtype=jnp.float32)
    out5 = jax.block_until_ready(
        square_regularize_loss(x5, p=2, target_block_bytes=8192))
    ref5 = _reference(x5, p=2)
    assert jnp.allclose(out5, ref5, rtol=1e-5, atol=1e-5), (out5, ref5)

    print("KERNEL_OK")
</pallas_src>

<mosaic_0001>
module attributes {stable_mosaic.version = 11 : i64} {
  func.func @_sqreg_kernel(%arg0: i32, %arg1: i32, %arg2: memref<2x4x2x128xf32, #tpu.memory_space<vmem>>, %arg3: memref<1x1xf32, #tpu.memory_space<smem>>) attributes {dimension_semantics = [#tpu.dimension_semantics<parallel>, #tpu.dimension_semantics<parallel>], iteration_bounds = array<i64: 1, 1>, scalar_prefetch = 0 : i64, scratch_operands = 0 : i64, tpu.core_type = #tpu.core_type<tc>, window_params = [{transform_indices = @transform_0, window_bounds = array<i64: 2, 4, 2, 128>}, {transform_indices = @transform_1, window_bounds = array<i64: 1, 1>}]} {
    %c0 = arith.constant 0 : index
    %c0_0 = arith.constant 0 : index
    %c0_1 = arith.constant 0 : index
    %c0_2 = arith.constant 0 : index
    %0 = vector.load %arg2[%c0, %c0_0, %c0_1, %c0_2] : memref<2x4x2x128xf32, #tpu.memory_space<vmem>>, vector<2x1x2x128xf32>
    %1 = vector.shape_cast %0 : vector<2x1x2x128xf32> to vector<2x2x128xf32>
    %2 = arith.mulf %1, %1 : vector<2x2x128xf32>
    %c0_3 = arith.constant 0 : index
    %c1 = arith.constant 1 : index
    %c0_4 = arith.constant 0 : index
    %c0_5 = arith.constant 0 : index
    %3 = vector.load %arg2[%c0_3, %c1, %c0_4, %c0_5] : memref<2x4x2x128xf32, #tpu.memory_space<vmem>>, vector<2x1x2x128xf32>
    %4 = vector.shape_cast %3 : vector<2x1x2x128xf32> to vector<2x2x128xf32>
    %5 = arith.mulf %4, %4 : vector<2x2x128xf32>
    %c0_6 = arith.constant 0 : index
    %c2 = arith.constant 2 : index
    %c0_7 = arith.constant 0 : index
    %c0_8 = arith.constant 0 : index
    %6 = vector.load %arg2[%c0_6, %c2, %c0_7, %c0_8] : memref<2x4x2x128xf32, #tpu.memory_space<vmem>>, vector<2x1x2x128xf32>
    %7 = vector.shape_cast %6 : vector<2x1x2x128xf32> to vector<2x2x128xf32>
    %8 = arith.mulf %7, %7 : vector<2x2x128xf32>
    %c0_9 = arith.constant 0 : index
    %c3 = arith.constant 3 : index
    %c0_10 = arith.constant 0 : index
    %c0_11 = arith.constant 0 : index
    %9 = vector.load %arg2[%c0_9, %c3, %c0_10, %c0_11] : memref<2x4x2x128xf32, #tpu.memory_space<vmem>>, vector<2x1x2x128xf32>
    %10 = vector.shape_cast %9 : vector<2x1x2x128xf32> to vector<2x2x128xf32>
    %11 = arith.mulf %10, %10 : vector<2x2x128xf32>
    %12 = arith.addf %2, %5 : vector<2x2x128xf32>
    %13 = arith.addf %12, %8 : vector<2x2x128xf32>
    %14 = arith.addf %13, %11 : vector<2x2x128xf32>
    %cst = arith.constant 1.000000e+00 : f32
    %15 = vector.broadcast %cst : f32 to vector<2x2x128xf32>
    %16 = arith.subf %15, %14 : vector<2x2x128xf32>
    %17 = math.absf %16 : vector<2x2x128xf32>
    %cst_12 = arith.constant dense<0.000000e+00> : vector<2x128xf32>
    %18 = vector.multi_reduction <add>, %17, %cst_12 [0] : vector<2x2x128xf32> to vector<2x128xf32>
    %19 = vector.shape_cast %18 : vector<2x128xf32> to vector<1x2x128xf32>
    %cst_13 = arith.constant dense<0.000000e+00> : vector<1xf32>
    %20 = vector.multi_reduction <add>, %19, %cst_13 [1, 2] : vector<1x2x128xf32> to vector<1xf32>
    %21 = vector.shape_cast %20 : vector<1xf32> to vector<1x1x1xf32>
    %22 = vector.extract %21[0, 0, 0] : f32 from vector<1x1x1xf32>
    %c0_14 = arith.constant 0 : index
    %c0_15 = arith.constant 0 : index
    %23 = memref.load %arg3[%c0_14, %c0_15] : memref<1x1xf32, #tpu.memory_space<smem>>
    memref.store %22, %arg3[%c0_14, %c0_15] : memref<1x1xf32, #tpu.memory_space<smem>>
    return
  }
  func.func @transform_0(%arg0: i32, %arg1: i32) -> (i32, i32, i32, i32) {
    %c0_i32 = arith.constant 0 : i32
    %c0_i32_0 = arith.constant 0 : i32
    %c0_i32_1 = arith.constant 0 : i32
    return %arg0, %c0_i32, %arg1, %c0_i32_0 : i32, i32, i32, i32
  }
  func.func @transform_1(%arg0: i32, %arg1: i32) -> (i32, i32) {
    %c0_i32 = arith.constant 0 : i32
    return %arg0, %arg1 : i32, i32
  }
}

</mosaic_0001>

<bundles_post_ra>
// kernel: tpu_custom_call.1
= control target key start
LH: loop header
LB: loop body
LE: loop exit
PB: predicated region body
PF: predicated region fallthrough
CT: control target
= control target key end

     0   :  { %6 = vsyncpa [#allocation3], 0  ;;  %s162_s0 = inlined_call_operand.hbm [shape: f32[2,4,2,128], index: 0, kind: input, shape index: {}]   ;;  %s163_s1 = inlined_call_operand.hbm [shape: f32[1,1], index: 1, kind: output, shape index: {}]  }
   0x1   :  { %7 = vsyncpa [#allocation4], 0  ;;  %s124_s6 = smov [#allocation2]   ;;  %s88_s10 = scalar_lea.hbm %s162_s0, 256 }
   0x2   :  { %s13_s7 = sshll.u32 %s124_s6, 4  ;;  %p89_p0 = scmp.ne.s32.totalorder %s162_s0, %s88_s10  ;;  %s14_s7 = int_to_ptr.vmem [resolvable:$true] %s13_s7 }
   0x3   :  { %p92_p1 = scmp.lt.u32.totalorder %s88_s10, %s162_s0 }
   0x5   :  { %p94_p2 = pnand %p92_p1, %p89_p0 }
   0x7   :  { %97 = shalt.err (!%p94_p2)
}
   0x8   :  { %s98_s15 = scalar_lea.vmem %s14_s7, 256  ;;  %p103_p4 = scmp.lt.s32.totalorder %s14_s7, %s14_s7 }
   0x9   :  { %p99_p3 = scmp.ne.s32.totalorder %s14_s7, %s98_s15  ;;  %p104_p5 = scmp.lt.s32.totalorder %s98_s15, %s98_s15 }
   0xb   :  { %p105_p6 = por %p104_p5, %p103_p4 }
   0xd   :  { %p106_p7 = pnand %p105_p6, %p99_p3 }
   0xf   :  { %109 = shalt.err (!%p106_p7)
}
  0x10   :  { %s125_s16 = smov 32   ;;  %s126_s17 = smov 2  }
  0x11   :  { %19 = dma.hbm_to_vmem [thread:$0]  %s162_s0, 256, %s14_s7, [#allocation3], %s125_s16, %s125_s16, %s126_s17  }
  0x12   :  { %120 = dma.done.wait [#allocation3], 256  }
  0x13   :  { %121 = vsyncadd [#allocation3], 4294967040  ;;  %v23_v0 = vld [vmem:[#allocation2] sm:$0x3]  ;;  %v24_v1 = vld [vmem:[#allocation2 + $0x8] sm:$0x3] }
  0x14   :  { %v28_v2 = vld [vmem:[#allocation2 + $0x2] sm:$0x3]  ;;  %v25_v3 = vmul.f32 %v23_v0, %v23_v0  ;;  %v26_v4 = vmul.f32 %v24_v1, %v24_v1  ;;  %v29_v5 = vld [vmem:[#allocation2 + $0xa] sm:$0x3]  ;;  %v33_v7 = vld [vmem:[#allocation2 + $0x4] sm:$0x3] }
  0x15   :  { %v30_v6 = vmul.f32 %v28_v2, %v28_v2  ;;  %v34_v8 = vld [vmem:[#allocation2 + $0xc] sm:$0x3]  ;;  %v31_v9 = vmul.f32 %v29_v5, %v29_v5  ;;  %v35_v10 = vmul.f32 %v33_v7, %v33_v7  ;;  %v38_v12 = vld [vmem:[#allocation2 + $0x6] sm:$0x3]  ;;  %v39_v13 = vld [vmem:[#allocation2 + $0xe] sm:$0x3] }
  0x16   :  { %v36_v11 = vmul.f32 %v34_v8, %v34_v8  ;;  %v40_v14 = vmul.f32 %v38_v12, %v38_v12  ;;  %v41_v16 = vmul.f32 %v39_v13, %v39_v13  ;;  %vm52_vm0 = vcmask 1041408   ;;  %s110_s22 = scalar_lea.hbm %s163_s1, 16 }
  0x17   :  { %v42_v15 = vadd.f32 %v30_v6, %v25_v3  ;;  %v43_v17 = vadd.f32 %v31_v9, %v26_v4  ;;  %p111_p8 = scmp.ne.s32.totalorder %s163_s1, %s110_s22  ;;  %p114_p9 = scmp.lt.u32.totalorder %s110_s22, %s163_s1 }
  0x19   :  { %v44_v18 = vadd.f32 %v42_v15, %v35_v10  ;;  %v45_v19 = vadd.f32 %v43_v17, %v36_v11  ;;  %p116_p10 = pnand %p114_p9, %p111_p8 }
  0x1b   :  { %v46_v20 = vadd.f32 %v44_v18, %v40_v14  ;;  %v47_v21 = vadd.f32 %v45_v19, %v41_v16 }
  0x1d   :  { %v48_v22 = vsub.f32 1.0, %v46_v20  ;;  %v49_v23 = vsub.f32 1.0, %v47_v21 }
  0x1f   :  { %v50_v24 = vand.u32 2147483647, %v48_v22  ;;  %v51_v25 = vand.u32 2147483647, %v49_v23 }
  0x21   :  { %v53_v26 = vsel %vm52_vm0, %v50_v24, 0.0  ;;  %v54_v27 = vsel %vm52_vm0, %v51_v25, 0.0 }
  0x22   :  { %v55_v28 = vadd.f32 %v54_v27, %v53_v26 }
  0x24   :  { %v56_v29 = vsel %vm52_vm0, %v55_v28, 0.0 }
  0x25   :  { %57 = vadd.xlane.f32.xlu0 %v56_v29 }
  0xb2   :  { %v58_v30 = vpop.xlane.xlu0 %57 }
  0xb3   :  { %v59_v31 = vrot.slane %v58_v30, 4 }
  0xb5   :  { %v60_v32 = vadd.f32 %v59_v31, %v58_v30 }
  0xb7   :  { %v61_v33 = vrot.slane %v60_v32, 2 }
  0xb9   :  { %v62_v34 = vadd.f32 %v61_v33, %v60_v32 }
  0xbb   :  { %v63_v35 = vrot.slane %v62_v34, 1 }
  0xbd   :  { %v64_v36 = vadd.f32 %v63_v35, %v62_v34 }
  0xbf   :  { %82 = vpush %v64_v36 }
  0xf0   :  { %s83_s0 = spop %82 }
  0xf1   :  { %67 = sst [smem:[#allocation5]] %s83_s0 }
  0xf2   :  { %119 = shalt.err (!%p116_p10)
}
  0xf3   :  { %s127_s27 = smov [#allocation5]  }
  0xf4   :  { %75 = dma.smem_to_hbm %s127_s27, 16, %s163_s1, [#allocation4]  }
  0xf5   :  { %122 = dma.done.wait [#allocation4], 16  }
  0xf6   :  { %123 = vsyncadd [#allocation4], 4294967280 }
  0xf7   :  { %79 = sfence }
  0xf8   :  { %80 = vsyncpa [#allocation3], 1 }
  0xf9   :  { %81 = vsyncpa [#allocation4], 1 }

</bundles_post_ra>
